<compile_context>
chip_gen: v5e
topology: v5e:2x2
jax: 0.10.0
libtpu: 0.0.40
codegen_flags: <defaults>
</compile_context>

<pallas_src>
import jax
import jax.numpy as jnp
from jax.experimental import pallas as pl
from jax.experimental.pallas import tpu as pltpu


HIDDEN = 256


def critic_kernel(sa_ref, w14_ref, b14_ref, w25_ref, b25_ref,
                  w3_ref, w6_ref, b36_ref, q_ref):
    """Fused two-head critic: q[:, 0] = Q1, q[:, 1] = Q2."""
    sa = sa_ref[...]                                         # [tb, sd+ad] bf16

    # ---- Layer 1 of both heads fused (columns 0:256 -> Q1, 256:512 -> Q2) ----
    hg = jnp.dot(sa, w14_ref[...], preferred_element_type=jnp.float32) + b14_ref[...]
    hg = jnp.maximum(hg, 0.0).astype(jnp.bfloat16)           # relu(bn*(l1/l4(sa)))

    # ---- Layer 2, per head, weights stacked as [2, 256, 256] ----
    h1 = jnp.dot(hg[:, :HIDDEN], w25_ref[0],
                 preferred_element_type=jnp.float32) + b25_ref[0]
    h2 = jnp.dot(hg[:, HIDDEN:], w25_ref[1],
                 preferred_element_type=jnp.float32) + b25_ref[1]
    h1 = jnp.maximum(h1, 0.0)                                # relu(bn*(l2/l5(.)))
    h2 = jnp.maximum(h2, 0.0)
    # grad_clip (GradientSurgery) is identity in the forward pass.

    # ---- Layer 3 (l3/l6): N=1 projection as VPU multiply + lane reduction ----
    # (avoids the [tb,512] hcat copy and a block-diagonal MXU push/drain)
    q1 = jnp.sum(h1 * w3_ref[...], axis=-1, keepdims=True)   # [tb, 1]
    q2 = jnp.sum(h2 * w6_ref[...], axis=-1, keepdims=True)   # [tb, 1]
    q_ref[...] = jnp.concatenate([q1, q2], axis=-1) + b36_ref[...]


def _pick_tile_b(B, tile_b):
    """Batch tile: multiple of 8 (or full B), capped at tile_b, and split so the
    'parallel' grid has >= 2 steps whenever B > 8 (feeds both v7x TCs)."""
    if B <= 8:
        return B                                   # single full-dim block
    tb = min(tile_b, B)
    if tb >= B:                                    # would be a 1-step grid -> split
        tb = pl.cdiv(B, 2)
        tb = ((tb + 7) // 8) * 8                   # round up to sublane multiple
    else:
        tb = max(8, (tb // 8) * 8)                 # round down to sublane multiple
    return tb


def critic_forward(state, action, params, tile_b=1024):
    """state: [B, state_dim], action: [B, action_dim] -> (q1 [B,1], q2 [B,1])."""
    B = state.shape[0]
    # Fuse + pre-cast outside the kernel: one K=(sd+ad) bf16 operand.
    sa = jnp.concatenate([state, action], axis=1).astype(jnp.bfloat16)
    in_dim = sa.shape[1]

    tb = _pick_tile_b(B, tile_b)
    grid = (pl.cdiv(B, tb),)          # ragged last block handled by Pallas masking

    w14, b14 = params["w14"], params["b14"]
    w25, b25 = params["w25"], params["b25"]
    w3, w6, b36 = params["w3"], params["w6"], params["b36"]

    in_specs = [
        pl.BlockSpec((tb, in_dim), lambda i: (i, 0)),       # sa tile (pipelined)
        pl.BlockSpec(w14.shape, lambda i: (0, 0)),          # weights: VMEM-resident
        pl.BlockSpec(b14.shape, lambda i: (0, 0)),
        pl.BlockSpec(w25.shape, lambda i: (0, 0, 0)),
        pl.BlockSpec(b25.shape, lambda i: (0, 0, 0)),
        pl.BlockSpec(w3.shape, lambda i: (0, 0)),
        pl.BlockSpec(w6.shape, lambda i: (0, 0)),
        pl.BlockSpec(b36.shape, lambda i: (0, 0)),
    ]
    out_specs = pl.BlockSpec((tb, 2), lambda i: (i, 0))
    out_shape = jax.ShapeDtypeStruct((B, 2), jnp.float32)

    q = pl.pallas_call(
        critic_kernel,
        grid=grid,
        in_specs=in_specs,
        out_specs=out_specs,
        out_shape=out_shape,
        compiler_params=pltpu.CompilerParams(
            dimension_semantics=("parallel",),
            # v5e scoped-VMEM default is 16 MiB; only raise it if the caller
            # requests tiles larger than the (safe-everywhere) 1024 default.
            vmem_limit_bytes=(48 * 1024 * 1024 if tb > 1024 else None),
        ),
    )(sa, w14, b14, w25, b25, w3, w6, b36)

    return q[:, 0:1], q[:, 1:2]


def init_params(key, state_dim, action_dim):
    """PyTorch nn.Linear-style init (U[-1/sqrt(fan_in), +]) packed/fused for the kernel."""
    def linear_init(k, fan_in, fan_out):
        kw, kb = jax.random.split(k)
        bound = float(1.0 / (fan_in ** 0.5))
        w = jax.random.uniform(kw, (fan_in, fan_out), jnp.float32, -bound, bound)
        b = jax.random.uniform(kb, (1, fan_out), jnp.float32, -bound, bound)
        return w, b

    in_dim = state_dim + action_dim
    keys = jax.random.split(key, 6)
    w1, b1 = linear_init(keys[0], in_dim, HIDDEN)
    w2, b2 = linear_init(keys[1], HIDDEN, HIDDEN)
    w3, b3 = linear_init(keys[2], HIDDEN, 1)
    w4, b4 = linear_init(keys[3], in_dim, HIDDEN)
    w5, b5 = linear_init(keys[4], HIDDEN, HIDDEN)
    w6, b6 = linear_init(keys[5], HIDDEN, 1)

    return {
        "w14": jnp.concatenate([w1, w4], axis=1).astype(jnp.bfloat16),  # [in, 512]
        "b14": jnp.concatenate([b1, b4], axis=1),                       # [1, 512] f32
        "w25": jnp.stack([w2, w5]).astype(jnp.bfloat16),                # [2, 256, 256]
        "b25": jnp.stack([b2, b5]),                                     # [2, 1, 256] f32
        "w3":  w3.T,                                                    # [1, 256] f32
        "w6":  w6.T,                                                    # [1, 256] f32
        "b36": jnp.concatenate([b3, b6], axis=1),                       # [1, 2]   f32
    }


def critic_ref(state, action, params):
    """Pure-JAX reference mirroring the kernel numerics (bf16 weights, f32 accum)."""
    sa = jnp.concatenate([state, action], axis=1).astype(jnp.bfloat16)
    hg = jnp.dot(sa, params["w14"], preferred_element_type=jnp.float32) + params["b14"]
    hg = jnp.maximum(hg, 0.0).astype(jnp.bfloat16)
    h1 = jnp.maximum(jnp.dot(hg[:, :HIDDEN], params["w25"][0],
                             preferred_element_type=jnp.float32) + params["b25"][0], 0.0)
    h2 = jnp.maximum(jnp.dot(hg[:, HIDDEN:], params["w25"][1],
                             preferred_element_type=jnp.float32) + params["b25"][1], 0.0)
    q1 = jnp.sum(h1 * params["w3"], axis=-1, keepdims=True) + params["b36"][:, 0:1]
    q2 = jnp.sum(h2 * params["w6"], axis=-1, keepdims=True) + params["b36"][:, 1:2]
    return q1, q2


if __name__ == "__main__":
    state_dim, action_dim = 12, 4

    key = jax.random.PRNGKey(0)
    key, ks, ka, kp = jax.random.split(key, 4)
    params = init_params(kp, state_dim, action_dim)

    # Small-batch path: single grid point, full-array blocks.
    B = 2
    state = jax.random.normal(ks, (B, state_dim), jnp.float32)
    action = jax.random.normal(ka, (B, action_dim), jnp.float32)
    q1, q2 = critic_forward(state, action, params)
    jax.block_until_ready((q1, q2))
    r1, r2 = critic_ref(state, action, params)
    assert q1.shape == (B, 1) and q2.shape == (B, 1)
    assert jnp.allclose(q1, r1, atol=1e-3, rtol=1e-3)
    assert jnp.allclose(q2, r2, atol=1e-3, rtol=1e-3)

    # Ragged batch-tiled path (no pre-pad; Pallas masks the last partial block).
    key, kb1, kb2 = jax.random.split(key, 3)
    B2 = 100
    state2 = jax.random.normal(kb1, (B2, state_dim), jnp.float32)
    action2 = jax.random.normal(kb2, (B2, action_dim), jnp.float32)
    q1b, q2b = critic_forward(state2, action2, params, tile_b=64)
    jax.block_until_ready((q1b, q2b))
    r1b, r2b = critic_ref(state2, action2, params)
    assert q1b.shape == (B2, 1) and q2b.shape == (B2, 1)
    assert jnp.allclose(q1b, r1b, atol=1e-3, rtol=1e-3)
    assert jnp.allclose(q2b, r2b, atol=1e-3, rtol=1e-3)

    # Default tile path: tile picker splits into >= 2 grid steps (v7x both cores).
    q1c, q2c = critic_forward(state2, action2, params)
    jax.block_until_ready((q1c, q2c))
    assert jnp.allclose(q1c, r1b, atol=1e-3, rtol=1e-3)
    assert jnp.allclose(q2c, r2b, atol=1e-3, rtol=1e-3)

    print("KERNEL_OK")
</pallas_src>

<mosaic_0001>
module attributes {stable_mosaic.version = 11 : i64} {
  func.func @critic_kernel(%arg0: i32, %arg1: memref<2x16xbf16, #tpu.memory_space<vmem>>, %arg2: memref<16x512xbf16, #tpu.memory_space<vmem>>, %arg3: memref<1x512xf32, #tpu.memory_space<vmem>>, %arg4: memref<2x256x256xbf16, #tpu.memory_space<vmem>>, %arg5: memref<2x1x256xf32, #tpu.memory_space<vmem>>, %arg6: memref<1x256xf32, #tpu.memory_space<vmem>>, %arg7: memref<1x256xf32, #tpu.memory_space<vmem>>, %arg8: memref<1x2xf32, #tpu.memory_space<vmem>>, %arg9: memref<2x2xf32, #tpu.memory_space<vmem>>) attributes {dimension_semantics = [#tpu.dimension_semantics<parallel>], iteration_bounds = array<i64: 1>, scalar_prefetch = 0 : i64, scratch_operands = 0 : i64, tpu.core_type = #tpu.core_type<tc>, window_params = [{transform_indices = @transform_0, window_bounds = array<i64: 2, 16>}, {pipeline_mode = #tpu.pipeline_mode<synchronous>, transform_indices = @transform_1, window_bounds = array<i64: 16, 512>}, {pipeline_mode = #tpu.pipeline_mode<synchronous>, transform_indices = @transform_2, window_bounds = array<i64: 1, 512>}, {pipeline_mode = #tpu.pipeline_mode<synchronous>, transform_indices = @transform_3, window_bounds = array<i64: 2, 256, 256>}, {pipeline_mode = #tpu.pipeline_mode<synchronous>, transform_indices = @transform_4, window_bounds = array<i64: 2, 1, 256>}, {pipeline_mode = #tpu.pipeline_mode<synchronous>, transform_indices = @transform_5, window_bounds = array<i64: 1, 256>}, {pipeline_mode = #tpu.pipeline_mode<synchronous>, transform_indices = @transform_6, window_bounds = array<i64: 1, 256>}, {pipeline_mode = #tpu.pipeline_mode<synchronous>, transform_indices = @transform_7, window_bounds = array<i64: 1, 2>}, {transform_indices = @transform_8, window_bounds = array<i64: 2, 2>}]} {
    %c0 = arith.constant 0 : index
    %c0_0 = arith.constant 0 : index
    %0 = vector.load %arg1[%c0, %c0_0] : memref<2x16xbf16, #tpu.memory_space<vmem>>, vector<2x16xbf16>
    %c0_1 = arith.constant 0 : index
    %c0_2 = arith.constant 0 : index
    %1 = vector.load %arg2[%c0_1, %c0_2] : memref<16x512xbf16, #tpu.memory_space<vmem>>, vector<16x512xbf16>
    %cst = arith.constant dense<0.000000e+00> : vector<2x512xf32>
    %2 = tpu.matmul %0, %1, %cst {dimension_numbers = #tpu.dot_dimension_numbers<[1], [0], [0], [1], [0, 0, 1, 1], [], []>} : vector<2x16xbf16>, vector<16x512xbf16>, vector<2x512xf32> -> vector<2x512xf32>
    %c0_3 = arith.constant 0 : index
    %c0_4 = arith.constant 0 : index
    %3 = vector.load %arg3[%c0_3, %c0_4] : memref<1x512xf32, #tpu.memory_space<vmem>>, vector<1x512xf32>
    %4 = vector.broadcast %3 : vector<1x512xf32> to vector<2x512xf32>
    %5 = arith.addf %2, %4 : vector<2x512xf32>
    %cst_5 = arith.constant 0.000000e+00 : f32
    %6 = vector.broadcast %cst_5 : f32 to vector<2x512xf32>
    %7 = arith.maximumf %5, %6 : vector<2x512xf32>
    %8 = arith.truncf %7 : vector<2x512xf32> to vector<2x512xbf16>
    %9 = vector.extract_strided_slice %8 {offsets = [0, 0], sizes = [2, 256], strides = [1, 1]} : vector<2x512xbf16> to vector<2x256xbf16>
    %c0_6 = arith.constant 0 : index
    %c0_7 = arith.constant 0 : index
    %c0_8 = arith.constant 0 : index
    %10 = vector.load %arg4[%c0_6, %c0_7, %c0_8] : memref<2x256x256xbf16, #tpu.memory_space<vmem>>, vector<1x256x256xbf16>
    %11 = vector.shape_cast %10 : vector<1x256x256xbf16> to vector<256x256xbf16>
    %cst_9 = arith.constant dense<0.000000e+00> : vector<2x256xf32>
    %12 = tpu.matmul %9, %11, %cst_9 {dimension_numbers = #tpu.dot_dimension_numbers<[1], [0], [0], [1], [0, 0, 1, 1], [], []>} : vector<2x256xbf16>, vector<256x256xbf16>, vector<2x256xf32> -> vector<2x256xf32>
    %c0_10 = arith.constant 0 : index
    %c0_11 = arith.constant 0 : index
    %c0_12 = arith.constant 0 : index
    %13 = vector.load %arg5[%c0_10, %c0_11, %c0_12] : memref<2x1x256xf32, #tpu.memory_space<vmem>>, vector<1x1x256xf32>
    %14 = vector.shape_cast %13 : vector<1x1x256xf32> to vector<1x256xf32>
    %15 = vector.broadcast %14 : vector<1x256xf32> to vector<2x256xf32>
    %16 = arith.addf %12, %15 : vector<2x256xf32>
    %17 = vector.extract_strided_slice %8 {offsets = [0, 256], sizes = [2, 256], strides = [1, 1]} : vector<2x512xbf16> to vector<2x256xbf16>
    %c1 = arith.constant 1 : index
    %c0_13 = arith.constant 0 : index
    %c0_14 = arith.constant 0 : index
    %18 = vector.load %arg4[%c1, %c0_13, %c0_14] : memref<2x256x256xbf16, #tpu.memory_space<vmem>>, vector<1x256x256xbf16>
    %19 = vector.shape_cast %18 : vector<1x256x256xbf16> to vector<256x256xbf16>
    %cst_15 = arith.constant dense<0.000000e+00> : vector<2x256xf32>
    %20 = tpu.matmul %17, %19, %cst_15 {dimension_numbers = #tpu.dot_dimension_numbers<[1], [0], [0], [1], [0, 0, 1, 1], [], []>} : vector<2x256xbf16>, vector<256x256xbf16>, vector<2x256xf32> -> vector<2x256xf32>
    %c1_16 = arith.constant 1 : index
    %c0_17 = arith.constant 0 : index
    %c0_18 = arith.constant 0 : index
    %21 = vector.load %arg5[%c1_16, %c0_17, %c0_18] : memref<2x1x256xf32, #tpu.memory_space<vmem>>, vector<1x1x256xf32>
    %22 = vector.shape_cast %21 : vector<1x1x256xf32> to vector<1x256xf32>
    %23 = vector.broadcast %22 : vector<1x256xf32> to vector<2x256xf32>
    %24 = arith.addf %20, %23 : vector<2x256xf32>
    %cst_19 = arith.constant 0.000000e+00 : f32
    %25 = vector.broadcast %cst_19 : f32 to vector<2x256xf32>
    %26 = arith.maximumf %16, %25 : vector<2x256xf32>
    %cst_20 = arith.constant 0.000000e+00 : f32
    %27 = vector.broadcast %cst_20 : f32 to vector<2x256xf32>
    %28 = arith.maximumf %24, %27 : vector<2x256xf32>
    %c0_21 = arith.constant 0 : index
    %c0_22 = arith.constant 0 : index
    %29 = vector.load %arg6[%c0_21, %c0_22] : memref<1x256xf32, #tpu.memory_space<vmem>>, vector<1x256xf32>
    %30 = vector.broadcast %29 : vector<1x256xf32> to vector<2x256xf32>
    %31 = arith.mulf %26, %30 : vector<2x256xf32>
    %cst_23 = arith.constant dense<0.000000e+00> : vector<2xf32>
    %32 = vector.multi_reduction <add>, %31, %cst_23 [1] : vector<2x256xf32> to vector<2xf32>
    %33 = vector.shape_cast %32 : vector<2xf32> to vector<2x1xf32>
    %c0_24 = arith.constant 0 : index
    %c0_25 = arith.constant 0 : index
    %34 = vector.load %arg7[%c0_24, %c0_25] : memref<1x256xf32, #tpu.memory_space<vmem>>, vector<1x256xf32>
    %35 = vector.broadcast %34 : vector<1x256xf32> to vector<2x256xf32>
    %36 = arith.mulf %28, %35 : vector<2x256xf32>
    %cst_26 = arith.constant dense<0.000000e+00> : vector<2xf32>
    %37 = vector.multi_reduction <add>, %36, %cst_26 [1] : vector<2x256xf32> to vector<2xf32>
    %38 = vector.shape_cast %37 : vector<2xf32> to vector<2x1xf32>
    %39 = tpu.concatenate %33, %38 in 1 : vector<2x1xf32>, vector<2x1xf32> -> vector<2x2xf32>
    %c0_27 = arith.constant 0 : index
    %c0_28 = arith.constant 0 : index
    %40 = vector.load %arg8[%c0_27, %c0_28] : memref<1x2xf32, #tpu.memory_space<vmem>>, vector<1x2xf32>
    %41 = vector.broadcast %40 : vector<1x2xf32> to vector<2x2xf32>
    %42 = arith.addf %39, %41 : vector<2x2xf32>
    %c0_29 = arith.constant 0 : index
    %c0_30 = arith.constant 0 : index
    %43 = vector.load %arg9[%c0_29, %c0_30] : memref<2x2xf32, #tpu.memory_space<vmem>>, vector<2x2xf32>
    tpu.vector_store %arg9[%c0_29, %c0_30], %42 {strides = array<i32>} : memref<2x2xf32, #tpu.memory_space<vmem>>, vector<2x2xf32>,
    return
  }
  func.func @transform_0(%arg0: i32) -> (i32, i32) {
    %c0_i32 = arith.constant 0 : i32
    %c0_i32_0 = arith.constant 0 : i32
    return %arg0, %c0_i32 : i32, i32
  }
  func.func @transform_1(%arg0: i32) -> (i32, i32) {
    %c0_i32 = arith.constant 0 : i32
    %c0_i32_0 = arith.constant 0 : i32
    %c0_i32_1 = arith.constant 0 : i32
    return %c0_i32, %c0_i32_0 : i32, i32
  }
  func.func @transform_2(%arg0: i32) -> (i32, i32) {
    %c0_i32 = arith.constant 0 : i32
    %c0_i32_0 = arith.constant 0 : i32
    %c0_i32_1 = arith.constant 0 : i32
    return %c0_i32, %c0_i32_0 : i32, i32
  }
  func.func @transform_3(%arg0: i32) -> (i32, i32, i32) {
    %c0_i32 = arith.constant 0 : i32
    %c0_i32_0 = arith.constant 0 : i32
    %c0_i32_1 = arith.constant 0 : i32
    %c0_i32_2 = arith.constant 0 : i32
    return %c0_i32, %c0_i32_0, %c0_i32_1 : i32, i32, i32
  }
  func.func @transform_4(%arg0: i32) -> (i32, i32, i32) {
    %c0_i32 = arith.constant 0 : i32
    %c0_i32_0 = arith.constant 0 : i32
    %c0_i32_1 = arith.constant 0 : i32
    %c0_i32_2 = arith.constant 0 : i32
    return %c0_i32, %c0_i32_0, %c0_i32_1 : i32, i32, i32
  }
  func.func @transform_5(%arg0: i32) -> (i32, i32) {
    %c0_i32 = arith.constant 0 : i32
    %c0_i32_0 = arith.constant 0 : i32
    %c0_i32_1 = arith.constant 0 : i32
    return %c0_i32, %c0_i32_0 : i32, i32
  }
  func.func @transform_6(%arg0: i32) -> (i32, i32) {
    %c0_i32 = arith.constant 0 : i32
    %c0_i32_0 = arith.constant 0 : i32
    %c0_i32_1 = arith.constant 0 : i32
    return %c0_i32, %c0_i32_0 : i32, i32
  }
  func.func @transform_7(%arg0: i32) -> (i32, i32) {
    %c0_i32 = arith.constant 0 : i32
    %c0_i32_0 = arith.constant 0 : i32
    %c0_i32_1 = arith.constant 0 : i32
    return %c0_i32, %c0_i32_0 : i32, i32
  }
  func.func @transform_8(%arg0: i32) -> (i32, i32) {
    %c0_i32 = arith.constant 0 : i32
    %c0_i32_0 = arith.constant 0 : i32
    return %arg0, %c0_i32 : i32, i32
  }
}

</mosaic_0001>

<bundles_post_ra>
// kernel: tpu_custom_call.1
= control target key start
LH: loop header
LB: loop body
LE: loop exit
PB: predicated region body
PF: predicated region fallthrough
CT: control target
= control target key end

     0   :  { %13 = vsyncpa [#allocation3], 0  ;;  %s1378_s0 = inlined_call_operand.hbm [shape: bf16[2,16], index: 0, kind: input, shape index: {}]   ;;  %s1379_s1 = inlined_call_operand.hbm [shape: bf16[16,512], index: 1, kind: input, shape index: {}]   ;;  %s1380_s2 = inlined_call_operand.hbm [shape: f32[1,512], index: 2, kind: input, shape index: {}]   ;;  %s1381_s3 = inlined_call_operand.hbm [shape: bf16[2,256,256], index: 3, kind: input, shape index: {}]   ;;  %s1382_s4 = inlined_call_operand.hbm [shape: f32[2,1,256], index: 4, kind: input, shape index: {}]   ;;  %s1383_s5 = inlined_call_operand.vmem [shape: f32[1,256], index: 5, kind: input, shape index: {}]   ;;  %s1384_s6 = inlined_call_operand.vmem [shape: f32[1,256], index: 6, kind: input, shape index: {}]   ;;  %s1385_s7 = inlined_call_operand.vmem [shape: f32[1,2], index: 7, kind: input, shape index: {}]   ;;  %s1386_s8 = inlined_call_operand.hbm [shape: f32[2,2], index: 8, kind: output, shape index: {}]  }
   0x1   :  { %14 = vsyncpa [#allocation6], 0 }
   0x2   :  { %15 = vsyncpa [#allocation9], 0  ;;  %s32_s29 = sshll.u32 %s1379_s1, 4  ;;  %s33_s29 = int_to_ptr.hbm [resolvable:$true] %s32_s29 }
   0x3   :  { %16 = vsyncpa [#allocation4], 0  ;;  %s1286_s30 = smov [#allocation5]   ;;  %s56_s12 = sshll.u32 %s1381_s3, 4  ;;  %s57_s12 = int_to_ptr.hbm [resolvable:$true] %s56_s12 }
   0x4   :  { %s34_s9 = sshll.u32 %s1286_s30, 4  ;;  %s1287_s13 = smov 256   ;;  %s35_s9 = int_to_ptr.vmem [resolvable:$true] %s34_s9 }
   0x5   :  { %s1288_s14 = smov 16   ;;  %s1289_s15 = smov [#allocation8]  }
   0x6   :  { %40 = dma.hbm_to_vmem [thread:$0]  %s33_s29, 512, %s35_s9, [#allocation6], %s1287_s13, %s1287_s13, %s1288_s14  }
   0x7   :  { %s58_s16 = sshll.u32 %s1289_s15, 4  ;;  %s1290_s17 = smov 128   ;;  %s59_s16 = int_to_ptr.vmem [resolvable:$true] %s58_s16 }
   0x8   :  { %s1291_s18 = smov 8   ;;  %s22_s20 = sshll.u32 %s1378_s0, 4  ;;  %s23_s20 = int_to_ptr.hbm [resolvable:$true] %s22_s20 }
   0x9   :  { %64 = dma.hbm_to_vmem [thread:$0]  %s57_s12, 8192, %s59_s16, [#allocation9], %s1290_s17, %s1290_s17, %s1291_s18  }
   0xa   :  { %s1292_s21 = smov [#allocation2]   ;;  %s46_s24 = sshll.u32 %s1380_s2, 4  ;;  %s47_s24 = int_to_ptr.hbm [resolvable:$true] %s46_s24 }
   0xb   :  { %s24_s22 = sshll.u32 %s1292_s21, 4  ;;  %s1293_s25 = smov [#allocation7]   ;;  %s25_s22 = int_to_ptr.vmem [resolvable:$true] %s24_s22 }
   0xc   :  { %27 = dma.hbm_to_vmem [thread:$0]  %s23_s20, 16, %s25_s22, [#allocation3]  }
   0xd   :  { %s48_s26 = sshll.u32 %s1293_s25, 4  ;;  %s69_s29 = sshll.u32 %s1382_s4, 4  ;;  %s49_s26 = int_to_ptr.vmem [resolvable:$true] %s48_s26  ;;  %s70_s29 = int_to_ptr.hbm [resolvable:$true] %s69_s29 }
   0xe   :  { %51 = dma.hbm_to_vmem [thread:$0]  %s47_s24, 64, %s49_s26, [#allocation6]  }
   0xf   :  { %s1294_s0 = smov [#allocation10]   ;;  %s1295_s9 = smov 32  }
  0x10   :  { %s71_s30 = sshll.u32 %s1294_s0, 4  ;;  %s1296_s10 = smov 2   ;;  %s72_s30 = int_to_ptr.vmem [resolvable:$true] %s71_s30 }
  0x11   :  { %77 = dma.hbm_to_vmem [thread:$0]  %s70_s29, 64, %s72_s30, [#allocation9], %s1295_s9, %s1295_s9, %s1296_s10  }
  0x12   :  { %1278 = dma.done.wait [#allocation3], 16  }
  0x13   :  { %1279 = vsyncadd [#allocation3], 4294967280 }
  0x14   :  { %1280 = dma.done.wait [#allocation6], 576  }
  0x15   :  { %1281 = vsyncadd [#allocation6], 4294966720 }
  0x16   :  { %1282 = dma.done.wait [#allocation9], 8256  }
  0x17   :  { %1283 = vsyncadd [#allocation9], 4294959040  ;;  %vm140_vm0 = vcmask 130048   ;;  %v779_v0 = vld [vmem:[#allocation5] sm:$0xf]  ;;  %vm730_vm1 = vcmask 1041408  }
  0x18   :  { %v1055_v1 = vld [vmem:[#allocation5 + $0xc] sm:$0xf0]  ;;  %v1053_v2 = vld [vmem:[#allocation5 + $0x4] sm:$0xf]  ;;  %v781_v4 = vld [vmem:[#allocation5 + $0x10] sm:$0xf0] }
  0x19   :  { %v780_v3 = vor.u32 %v1055_v1, %v779_v0  ;;  %v787_v5 = vld [vmem:[#allocation5 + $0x8] sm:$0xf]  ;;  %v1056_v6 = vld [vmem:[#allocation5 + $0x14] sm:$0xf0]  ;;  %v784_v7 = vor.u32 %v1053_v2, %v781_v4  ;;  %v1054_v9 = vld [vmem:[#allocation5 + $0xc] sm:$0xf] }
  0x1a   :  { %v788_v8 = vor.u32 %v1056_v6, %v787_v5  ;;  %v789_v10 = vld [vmem:[#allocation5 + $0x18] sm:$0xf0]  ;;  %v855_v13 = vld [vmem:[#allocation8 + $0x70] sm:$0xf]  ;;  %v1071_v18 = vld [vmem:[#allocation8 + $0x74] sm:$0xf] }
  0x1b   :  { %v105_v11 = vld [vmem:[#allocation2] sm:$0x1]  ;;  %151 = vmatpush.bf16.msra.mxu0 %v780_v3  ;;  %v792_v12 = vor.u32 %v1054_v9, %v789_v10  ;;  %v919_v15 = vld [vmem:[#allocation8 + $0xf0] sm:$0xf]  ;;  %164 = vmatpush.bf16.msra.mxu1 %v784_v7  ;;  %v857_v19 = vld [vmem:[#allocation8 + $0x78] sm:$0xf0] }
  0x1c   :  { %v1072_v14 = vld [vmem:[#allocation8 + $0x74] sm:$0xf0]  ;;  %177 = vmatpush.bf16.msra.mxu2 %v788_v8  ;;  %v860_v21 = vor.u32 %v1071_v18, %v857_v19  ;;  %v1087_v22 = vld [vmem:[#allocation8 + $0xf4] sm:$0xf]  ;;  %v921_v23 = vld [vmem:[#allocation8 + $0xf8] sm:$0xf0] }
  0x1d   :  { %v856_v16 = vor.u32 %v1072_v14, %v855_v13  ;;  %v1088_v17 = vld [vmem:[#allocation8 + $0xf4] sm:$0xf0]  ;;  %190 = vmatpush.bf16.msra.mxu3 %v792_v12  ;;  %v847_v24 = vld [vmem:[#allocation8 + $0x60] sm:$0xf]  ;;  %v924_v25 = vor.u32 %v1087_v22, %v921_v23  ;;  %v1070_v26 = vld [vmem:[#allocation8 + $0x64] sm:$0xf0] }
  0x1e   :  { %v920_v20 = vor.u32 %v1088_v17, %v919_v15  ;;  %793 = vmatmul.msk.bf16.vlgmr.msra.gmra.mxu0 %vm140_vm0, %v105_v11  ;;  %v911_v27 = vld [vmem:[#allocation8 + $0xe0] sm:$0xf]  ;;  %v1086_v28 = vld [vmem:[#allocation8 + $0xe4] sm:$0xf0]  ;;  %794 = vmatmul.msk.bf16.vlgmr.msra.gmra.mxu1 %vm140_vm0, %v105_v11  ;;  %v1069_v29 = vld [vmem:[#allocation8 + $0x64] sm:$0xf]  ;;  %v848_v32 = vor.u32 %v1070_v26, %v847_v24 }
  0x1f   :  { %795 = vmatmul.msk.bf16.vlgmr.msra.gmra.mxu2 %vm140_vm0, %v105_v11  ;;  %v849_v30 = vld [vmem:[#allocation8 + $0x68] sm:$0xf0]  ;;  %v1085_v31 = vld [vmem:[#allocation8 + $0xe4] sm:$0xf]  ;;  %407 = vmatpush.bf16.msrb.mxu0 %v856_v16  ;;  %v912_v34 = vor.u32 %v1086_v28, %v911_v27  ;;  %v839_v36 = vld [vmem:[#allocation8 + $0x50] sm:$0xf] }
  0x20   :  { %796 = vmatmul.msk.bf16.vlgmr.msra.gmra.mxu3 %vm140_vm0, %v105_v11  ;;  %v913_v33 = vld [vmem:[#allocation8 + $0xe8] sm:$0xf0]  ;;  %420 = vmatpush.bf16.msrb.mxu1 %v920_v20  ;;  %v852_v35 = vor.u32 %v1069_v29, %v849_v30  ;;  %v1068_v37 = vld [vmem:[#allocation8 + $0x54] sm:$0xf0]  ;;  %v903_v38 = vld [vmem:[#allocation8 + $0xd0] sm:$0xf] }
  0x21   :  { %433 = vmatpush.bf16.msrb.mxu2 %v860_v21  ;;  %446 = vmatpush.bf16.msrb.mxu3 %v924_v25  ;;  %v916_v39 = vor.u32 %v1085_v31, %v913_v33  ;;  %v1084_v40 = vld [vmem:[#allocation8 + $0xd4] sm:$0xf0]  ;;  %v1067_v41 = vld [vmem:[#allocation8 + $0x54] sm:$0xf]  ;;  %v841_v42 = vld [vmem:[#allocation8 + $0x58] sm:$0xf0]  ;;  %v840_v45 = vor.u32 %v1068_v37, %v839_v36 }
  0x22   :  { %v1083_v43 = vld [vmem:[#allocation8 + $0xd4] sm:$0xf]  ;;  %v905_v44 = vld [vmem:[#allocation8 + $0xd8] sm:$0xf0]  ;;  %v904_v46 = vor.u32 %v1084_v40, %v903_v38  ;;  %v844_v47 = vor.u32 %v1067_v41, %v841_v42  ;;  %v831_v48 = vld [vmem:[#allocation8 + $0x40] sm:$0xf] }
  0x23   :  { %408 = vmatpush.bf16.msrb.mxu0 %v848_v32  ;;  %v1066_v49 = vld [vmem:[#allocation8 + $0x44] sm:$0xf0]  ;;  %v895_v50 = vld [vmem:[#allocation8 + $0xc0] sm:$0xf]  ;;  %v908_v51 = vor.u32 %v1083_v43, %v905_v44  ;;  %v1065_v53 = vld [vmem:[#allocation8 + $0x44] sm:$0xf] }
  0x24   :  { %421 = vmatpush.bf16.msrb.mxu1 %v912_v34  ;;  %v1082_v52 = vld [vmem:[#allocation8 + $0xc4] sm:$0xf0]  ;;  %v833_v54 = vld [vmem:[#allocation8 + $0x48] sm:$0xf0]  ;;  %v1081_v55 = vld [vmem:[#allocation8 + $0xc4] sm:$0xf]  ;;  %v832_v57 = vor.u32 %v1066_v49, %v831_v48 }
  0x25   :  { %434 = vmatpush.bf16.msrb.mxu2 %v852_v35  ;;  %447 = vmatpush.bf16.msrb.mxu3 %v916_v39  ;;  %v897_v56 = vld [vmem:[#allocation8 + $0xc8] sm:$0xf0]  ;;  %v896_v58 = vor.u32 %v1082_v52, %v895_v50  ;;  %v836_v59 = vor.u32 %v1065_v53, %v833_v54  ;;  %v823_v60 = vld [vmem:[#allocation8 + $0x30] sm:$0xf]  ;;  %v1064_v61 = vld [vmem:[#allocation8 + $0x34] sm:$0xf0] }
  0x26   :  { %v887_v62 = vld [vmem:[#allocation8 + $0xb0] sm:$0xf]  ;;  %v900_v63 = vor.u32 %v1081_v55, %v897_v56  ;;  %v1080_v0 = vld [vmem:[#allocation8 + $0xb4] sm:$0xf0]  ;;  %v1063_v1 = vld [vmem:[#allocation8 + $0x34] sm:$0xf]  ;;  %v824_v5 = vor.u32 %v1064_v61, %v823_v60 }
  0x27   :  { %409 = vmatpush.bf16.msrb.mxu0 %v840_v45  ;;  %v825_v2 = vld [vmem:[#allocation8 + $0x38] sm:$0xf0]  ;;  %v1079_v3 = vld [vmem:[#allocation8 + $0xb4] sm:$0xf]  ;;  %v888_v6 = vor.u32 %v1080_v0, %v887_v62  ;;  %v815_v8 = vld [vmem:[#allocation8 + $0x20] sm:$0xf] }
  0x28   :  { %422 = vmatpush.bf16.msrb.mxu1 %v904_v46  ;;  %v889_v4 = vld [vmem:[#allocation8 + $0xb8] sm:$0xf0]  ;;  %v828_v7 = vor.u32 %v1063_v1, %v825_v2  ;;  %v1062_v9 = vld [vmem:[#allocation8 + $0x24] sm:$0xf0]  ;;  %v879_v10 = vld [vmem:[#allocation8 + $0xa0] sm:$0xf] }
  0x29   :  { %435 = vmatpush.bf16.msrb.mxu2 %v844_v47  ;;  %448 = vmatpush.bf16.msrb.mxu3 %v908_v51  ;;  %v892_v11 = vor.u32 %v1079_v3, %v889_v4  ;;  %v1078_v12 = vld [vmem:[#allocation8 + $0xa4] sm:$0xf0]  ;;  %v1061_v13 = vld [vmem:[#allocation8 + $0x24] sm:$0xf]  ;;  %v817_v14 = vld [vmem:[#allocation8 + $0x28] sm:$0xf0]  ;;  %v816_v17 = vor.u32 %v1062_v9, %v815_v8 }
  0x2a   :  { %v1077_v15 = vld [vmem:[#allocation8 + $0xa4] sm:$0xf]  ;;  %v881_v16 = vld [vmem:[#allocation8 + $0xa8] sm:$0xf0]  ;;  %v880_v18 = vor.u32 %v1078_v12, %v879_v10  ;;  %v820_v19 = vor.u32 %v1061_v13, %v817_v14  ;;  %v807_v20 = vld [vmem:[#allocation8 + $0x10] sm:$0xf] }
  0x2b   :  { %410 = vmatpush.bf16.msrb.mxu0 %v832_v57  ;;  %v1060_v21 = vld [vmem:[#allocation8 + $0x14] sm:$0xf0]  ;;  %v871_v22 = vld [vmem:[#allocation8 + $0x90] sm:$0xf]  ;;  %v884_v23 = vor.u32 %v1077_v15, %v881_v16  ;;  %v1059_v25 = vld [vmem:[#allocation8 + $0x14] sm:$0xf] }
  0x2c   :  { %423 = vmatpush.bf16.msrb.mxu1 %v896_v58  ;;  %v1076_v24 = vld [vmem:[#allocation8 + $0x94] sm:$0xf0]  ;;  %v809_v26 = vld [vmem:[#allocation8 + $0x18] sm:$0xf0]  ;;  %v1075_v27 = vld [vmem:[#allocation8 + $0x94] sm:$0xf]  ;;  %v808_v29 = vor.u32 %v1060_v21, %v807_v20 }
  0x2d   :  { %436 = vmatpush.bf16.msrb.mxu2 %v836_v59  ;;  %449 = vmatpush.bf16.msrb.mxu3 %v900_v63  ;;  %v873_v28 = vld [vmem:[#allocation8 + $0x98] sm:$0xf0]  ;;  %v799_v30 = vld [vmem:[#allocation8] sm:$0xf]  ;;  %v1058_v31 = vld [vmem:[#allocation8 + $0x4] sm:$0xf0]  ;;  %v872_v32 = vor.u32 %v1076_v24, %v871_v22  ;;  %v812_v33 = vor.u32 %v1059_v25, %v809_v26 }
  0x2e   :  { %v863_v34 = vld [vmem:[#allocation8 + $0x80] sm:$0xf]  ;;  %v1074_v35 = vld [vmem:[#allocation8 + $0x84] sm:$0xf0]  ;;  %v1057_v36 = vld [vmem:[#allocation8 + $0x4] sm:$0xf]  ;;  %v876_v37 = vor.u32 %v1075_v27, %v873_v28  ;;  %v800_v44 = vor.u32 %v1058_v31, %v799_v30 }
  0x2f   :  { %411 = vmatpush.bf16.msrb.mxu0 %v824_v5  ;;  %v801_v38 = vld [vmem:[#allocation8 + $0x8] sm:$0xf0]  ;;  %v1073_v39 = vld [vmem:[#allocation8 + $0x84] sm:$0xf]  ;;  %v983_v41 = vld [vmem:[#allocation8 + $0x170] sm:$0xf]  ;;  %v864_v48 = vor.u32 %v1074_v35, %v863_v34 }
  0x30   :  { %424 = vmatpush.bf16.msrb.mxu1 %v888_v6  ;;  %v865_v40 = vld [vmem:[#allocation8 + $0x88] sm:$0xf0]  ;;  %v1104_v42 = vld [vmem:[#allocation8 + $0x174] sm:$0xf0]  ;;  %v1047_v43 = vld [vmem:[#allocation8 + $0x1f0] sm:$0xf]  ;;  %v804_v49 = vor.u32 %v1057_v36, %v801_v38 }
  0x31   :  { %437 = vmatpush.bf16.msrb.mxu2 %v828_v7  ;;  %450 = vmatpush.bf16.msrb.mxu3 %v892_v11  ;;  %v1120_v45 = vld [vmem:[#allocation8 + $0x1f4] sm:$0xf0]  ;;  %v1103_v46 = vld [vmem:[#allocation8 + $0x174] sm:$0xf]  ;;  %v985_v47 = vld [vmem:[#allocation8 + $0x178] sm:$0xf0]  ;;  %v868_v52 = vor.u32 %v1073_v39, %v865_v40  ;;  %v984_v53 = vor.u32 %v1104_v42, %v983_v41 }
  0x32   :  { %v1119_v50 = vld [vmem:[#allocation8 + $0x1f4] sm:$0xf]  ;;  %v1049_v51 = vld [vmem:[#allocation8 + $0x1f8] sm:$0xf0]  ;;  %v1048_v54 = vor.u32 %v1120_v45, %v1047_v43  ;;  %v988_v55 = vor.u32 %v1103_v46, %v985_v47  ;;  %v975_v57 = vld [vmem:[#allocation8 + $0x160] sm:$0xf] }
  0x33   :  { %412 = vmatpush.bf16.msrb.mxu0 %v816_v17  ;;  %v1052_v56 = vor.u32 %v1119_v50, %v1049_v51  ;;  %v1102_v58 = vld [vmem:[#allocation8 + $0x164] sm:$0xf0]  ;;  %v1039_v59 = vld [vmem:[#allocation8 + $0x1e0] sm:$0xf]  ;;  %v1101_v62 = vld [vmem:[#allocation8 + $0x164] sm:$0xf] }
  0x34   :  { %425 = vmatpush.bf16.msrb.mxu1 %v880_v18  ;;  %v976_v60 = vor.u32 %v1102_v58, %v975_v57  ;;  %v1118_v61 = vld [vmem:[#allocation8 + $0x1e4] sm:$0xf0]  ;;  %v977_v63 = vld [vmem:[#allocation8 + $0x168] sm:$0xf0]  ;;  %v1117_v2 = vld [vmem:[#allocation8 + $0x1e4] sm:$0xf] }
  0x35   :  { %438 = vmatpush.bf16.msrb.mxu2 %v820_v19  ;;  %451 = vmatpush.bf16.msrb.mxu3 %v884_v23  ;;  %v1040_v0 = vor.u32 %v1118_v61, %v1039_v59  ;;  %v980_v1 = vor.u32 %v1101_v62, %v977_v63  ;;  %v1041_v3 = vld [vmem:[#allocation8 + $0x1e8] sm:$0xf0]  ;;  %v967_v5 = vld [vmem:[#allocation8 + $0x150] sm:$0xf]  ;;  %v1100_v6 = vld [vmem:[#allocation8 + $0x154] sm:$0xf0] }
  0x36   :  { %v1044_v4 = vor.u32 %v1117_v2, %v1041_v3  ;;  %v1031_v7 = vld [vmem:[#allocation8 + $0x1d0] sm:$0xf]  ;;  %v968_v8 = vor.u32 %v1100_v6, %v967_v5  ;;  %v1116_v9 = vld [vmem:[#allocation8 + $0x1d4] sm:$0xf0]  ;;  %v1099_v10 = vld [vmem:[#allocation8 + $0x154] sm:$0xf] }
  0x37   :  { %413 = vmatpush.bf16.msrb.mxu0 %v808_v29  ;;  %v969_v11 = vld [vmem:[#allocation8 + $0x158] sm:$0xf0]  ;;  %v1032_v12 = vor.u32 %v1116_v9, %v1031_v7  ;;  %v1115_v14 = vld [vmem:[#allocation8 + $0x1d4] sm:$0xf]  ;;  %v959_v17 = vld [vmem:[#allocation8 + $0x140] sm:$0xf] }
  0x38   :  { %426 = vmatpush.bf16.msrb.mxu1 %v872_v32  ;;  %v972_v13 = vor.u32 %v1099_v10, %v969_v11  ;;  %v1033_v15 = vld [vmem:[#allocation8 + $0x1d8] sm:$0xf0]  ;;  %v1098_v18 = vld [vmem:[#allocation8 + $0x144] sm:$0xf0]  ;;  %v1023_v19 = vld [vmem:[#allocation8 + $0x1c0] sm:$0xf] }
  0x39   :  { %439 = vmatpush.bf16.msrb.mxu2 %v812_v33  ;;  %452 = vmatpush.bf16.msrb.mxu3 %v876_v37  ;;  %v1036_v16 = vor.u32 %v1115_v14, %v1033_v15  ;;  %v960_v20 = vor.u32 %v1098_v18, %v959_v17  ;;  %v1114_v21 = vld [vmem:[#allocation8 + $0x1c4] sm:$0xf0]  ;;  %v1097_v22 = vld [vmem:[#allocation8 + $0x144] sm:$0xf]  ;;  %v961_v23 = vld [vmem:[#allocation8 + $0x148] sm:$0xf0] }
  0x3a   :  { %v1024_v24 = vor.u32 %v1114_v21, %v1023_v19  ;;  %v964_v25 = vor.u32 %v1097_v22, %v961_v23  ;;  %v1113_v26 = vld [vmem:[#allocation8 + $0x1c4] sm:$0xf]  ;;  %v1025_v27 = vld [vmem:[#allocation8 + $0x1c8] sm:$0xf0]  ;;  %v951_v29 = vld [vmem:[#allocation8 + $0x130] sm:$0xf] }
  0x3b   :  { %414 = vmatpush.bf16.msrb.mxu0 %v800_v44  ;;  %v1028_v28 = vor.u32 %v1113_v26, %v1025_v27  ;;  %v1096_v30 = vld [vmem:[#allocation8 + $0x134] sm:$0xf0]  ;;  %v1015_v31 = vld [vmem:[#allocation8 + $0x1b0] sm:$0xf]  ;;  %v1095_v34 = vld [vmem:[#allocation8 + $0x134] sm:$0xf] }
  0x3c   :  { %427 = vmatpush.bf16.msrb.mxu1 %v864_v48  ;;  %v952_v32 = vor.u32 %v1096_v30, %v951_v29  ;;  %v1112_v33 = vld [vmem:[#allocation8 + $0x1b4] sm:$0xf0]  ;;  %v953_v35 = vld [vmem:[#allocation8 + $0x138] sm:$0xf0]  ;;  %v1111_v38 = vld [vmem:[#allocation8 + $0x1b4] sm:$0xf] }
  0x3d   :  { %440 = vmatpush.bf16.msrb.mxu2 %v804_v49  ;;  %453 = vmatpush.bf16.msrb.mxu3 %v868_v52  ;;  %v1016_v36 = vor.u32 %v1112_v33, %v1015_v31  ;;  %v956_v37 = vor.u32 %v1095_v34, %v953_v35  ;;  %v1017_v39 = vld [vmem:[#allocation8 + $0x1b8] sm:$0xf0]  ;;  %v943_v41 = vld [vmem:[#allocation8 + $0x120] sm:$0xf]  ;;  %v1094_v42 = vld [vmem:[#allocation8 + $0x124] sm:$0xf0] }
  0x3e   :  { %v1020_v40 = vor.u32 %v1111_v38, %v1017_v39  ;;  %v1007_v43 = vld [vmem:[#allocation8 + $0x1a0] sm:$0xf]  ;;  %v944_v44 = vor.u32 %v1094_v42, %v943_v41  ;;  %v1110_v45 = vld [vmem:[#allocation8 + $0x1a4] sm:$0xf0]  ;;  %v1093_v46 = vld [vmem:[#allocation8 + $0x124] sm:$0xf] }
  0x3f   :  { %666 = vmatpush.bf16.msra.mxu0 %v984_v53  ;;  %v945_v47 = vld [vmem:[#allocation8 + $0x128] sm:$0xf0]  ;;  %v1008_v48 = vor.u32 %v1110_v45, %v1007_v43  ;;  %v1109_v50 = vld [vmem:[#allocation8 + $0x1a4] sm:$0xf]  ;;  %v935_v52 = vld [vmem:[#allocation8 + $0x110] sm:$0xf] }
  0x40   :  { %679 = vmatpush.bf16.msra.mxu1 %v1048_v54  ;;  %v948_v49 = vor.u32 %v1093_v46, %v945_v47  ;;  %v1009_v51 = vld [vmem:[#allocation8 + $0x1a8] sm:$0xf0]  ;;  %v1092_v54 = vld [vmem:[#allocation8 + $0x114] sm:$0xf0]  ;;  %v1091_v59 = vld [vmem:[#allocation8 + $0x114] sm:$0xf] }
  0x41   :  { %692 = vmatpush.bf16.msra.mxu2 %v988_v55  ;;  %705 = vmatpush.bf16.msra.mxu3 %v1052_v56  ;;  %v1012_v53 = vor.u32 %v1109_v50, %v1009_v51  ;;  %v999_v55 = vld [vmem:[#allocation8 + $0x190] sm:$0xf]  ;;  %v1108_v56 = vld [vmem:[#allocation8 + $0x194] sm:$0xf0]  ;;  %v936_v57 = vor.u32 %v1092_v54, %v935_v52  ;;  %v1107_v61 = vld [vmem:[#allocation8 + $0x194] sm:$0xf] }
  0x42   :  { %v1000_v58 = vor.u32 %v1108_v56, %v999_v55  ;;  %v1001_v63 = vld [vmem:[#allocation8 + $0x198] sm:$0xf0]  ;;  %v991_v3 = vld [vmem:[#allocation8 + $0x180] sm:$0xf]  ;;  %v1089_v5 = vld [vmem:[#allocation8 + $0x104] sm:$0xf] }
  0x43   :  { %667 = vmatpush.bf16.msra.mxu0 %v976_v60  ;;  %v937_v60 = vld [vmem:[#allocation8 + $0x118] sm:$0xf0]  ;;  %v1004_v2 = vor.u32 %v1107_v61, %v1001_v63  ;;  %v929_v7 = vld [vmem:[#allocation8 + $0x108] sm:$0xf0]  ;;  %v722_v51 = vld [vmem:[%s1383_s5] sm:$0x3] }
  0x44   :  { %680 = vmatpush.bf16.msra.mxu1 %v1040_v0  ;;  %v940_v62 = vor.u32 %v1091_v59, %v937_v60  ;;  %v927_v0 = vld [vmem:[#allocation8 + $0x100] sm:$0xf]  ;;  %v993_v9 = vld [vmem:[#allocation8 + $0x188] sm:$0xf0]  ;;  %v932_v11 = vor.u32 %v1089_v5, %v929_v7  ;;  %v725_v61 = vperm.slane %v722_v51, 1  ;;  %vm749_vm2 = vcmask 7168  }
  0x45   :  { %693 = vmatpush.bf16.msra.mxu2 %v980_v1  ;;  %706 = vmatpush.bf16.msra.mxu3 %v1044_v4  ;;  %v1090_v1 = vld [vmem:[#allocation8 + $0x104] sm:$0xf0]  ;;  %v493_v60 = vld [vmem:[#allocation10 + $0x2] sm:$0x3]  ;;  %s1297_s13 = smov [#allocation11]   ;;  %s765_s17 = sshll.u32 %s1386_s8, 4  ;;  %s766_s17 = int_to_ptr.hbm [resolvable:$true] %s765_s17 }
  0x46   :  { %v1106_v4 = vld [vmem:[#allocation8 + $0x184] sm:$0xf0]  ;;  %v928_v6 = vor.u32 %v1090_v1, %v927_v0  ;;  %v495_v0 = vperm.slane %v493_v60, 0  ;;  %s763_s14 = sshll.u32 %s1297_s13, 4  ;;  %vm756_vm3 = vcmask 9216   ;;  %s764_s14 = int_to_ptr.vmem [resolvable:$true] %s763_s14 }
  0x47   :  { %668 = vmatpush.bf16.msra.mxu0 %v968_v8  ;;  %v1105_v8 = vld [vmem:[#allocation8 + $0x184] sm:$0xf]  ;;  %v992_v10 = vor.u32 %v1106_v4, %v991_v3 }
  0x48   :  { %681 = vmatpush.bf16.msra.mxu1 %v1032_v12  ;;  %v996_v12 = vor.u32 %v1105_v8, %v993_v9 }
  0x49   :  { %694 = vmatpush.bf16.msra.mxu2 %v972_v13  ;;  %707 = vmatpush.bf16.msra.mxu3 %v1036_v16  ;;  %v110_v13 = vld [vmem:[#allocation7] sm:$0xf] }
  0x4a   :  { %v112_v14 = vperm.slane %v110_v13, 0  ;;  %v113_v15 = vperm.slane %v110_v13, 1  ;;  %v114_v22 = vperm.slane %v110_v13, 2  ;;  %v115_v23 = vperm.slane %v110_v13, 3 }
  0x4b   :  { %669 = vmatpush.bf16.msra.mxu0 %v960_v20 }
  0x4c   :  { %682 = vmatpush.bf16.msra.mxu1 %v1024_v24 }
  0x4d   :  { %695 = vmatpush.bf16.msra.mxu2 %v964_v25  ;;  %708 = vmatpush.bf16.msra.mxu3 %v1028_v28 }
  0x4f   :  { %670 = vmatpush.bf16.msra.mxu0 %v952_v32 }
  0x50   :  { %683 = vmatpush.bf16.msra.mxu1 %v1016_v36 }
  0x51   :  { %696 = vmatpush.bf16.msra.mxu2 %v956_v37  ;;  %709 = vmatpush.bf16.msra.mxu3 %v1020_v40 }
  0x53   :  { %671 = vmatpush.bf16.msra.mxu0 %v944_v44  ;;  %v234_v44 = vld [vmem:[#allocation10] sm:$0x3] }
  0x54   :  { %684 = vmatpush.bf16.msra.mxu1 %v1008_v48  ;;  %v236_v45 = vperm.slane %v234_v44, 0  ;;  %v237_v50 = vperm.slane %v234_v44, 1 }
  0x55   :  { %697 = vmatpush.bf16.msra.mxu2 %v948_v49  ;;  %710 = vmatpush.bf16.msra.mxu3 %v1012_v53 }
  0x57   :  { %672 = vmatpush.bf16.msra.mxu0 %v936_v57 }
  0x58   :  { %685 = vmatpush.bf16.msra.mxu1 %v1000_v58  ;;  %v724_v58 = vperm.slane %v722_v51, 0 }
  0x59   :  { %698 = vmatpush.bf16.msra.mxu2 %v940_v62  ;;  %711 = vmatpush.bf16.msra.mxu3 %v1004_v2 }
  0x5b   :  { %673 = vmatpush.bf16.msra.mxu0 %v928_v6 }
  0x5c   :  { %686 = vmatpush.bf16.msra.mxu1 %v992_v10 }
  0x5d   :  { %699 = vmatpush.bf16.msra.mxu2 %v932_v11  ;;  %712 = vmatpush.bf16.msra.mxu3 %v996_v12  ;;  %v496_v11 = vperm.slane %v493_v60, 1  ;;  %v736_v12 = vld [vmem:[%s1384_s6] sm:$0x3] }
  0x9b   :  { %v153_v16 = vpop.f32.mrf.mxu0  ;;  %v166_v18 = vpop.f32.mrf.mxu1 }
  0x9c   :  { %v154_v17 = vadd.f32 %v153_v16, %v112_v14  ;;  %v167_v19 = vadd.f32 %v166_v18, %v113_v15  ;;  %v738_v16 = vperm.slane %v736_v12, 0 }
  0x9e   :  { %v196_v20 = vmax.f32 %v154_v17, 0.0  ;;  %v197_v21 = vmax.f32 %v167_v19, 0.0 }
  0xa0   :  { %v200_v24 = vpack.c.bf16 %v197_v21, %v196_v20  ;;  %v739_v21 = vperm.slane %v736_v12, 1 }
  0xa2   :  { %v179_v25 = vpop.f32.mrf.mxu2  ;;  %v241_v29 = vunpack.c.l.b16 %v200_v24  ;;  %v242_v30 = vunpack.c.h.b16 %v200_v24 }
  0xa3   :  { %v155_v26 = vpop.f32.mrf.mxu0  ;;  %v180_v27 = vadd.f32 %v179_v25, %v114_v22  ;;  %v192_v28 = vpop.f32.mrf.mxu3 }
  0xa4   :  { %v168_v31 = vpop.f32.mrf.mxu1  ;;  %v193_v32 = vadd.f32 %v192_v28, %v115_v23  ;;  %v243_v33 = vpack.c.b16 %v241_v29, %v241_v29  ;;  %v244_v34 = vpack.c.b16 %v242_v30, %v242_v30 }
  0xa5   :  { %v198_v35 = vmax.f32 %v180_v27, 0.0  ;;  %v1133_v31 = vld [vmem:[%s1385_s7] ss:$0 sm:$0xff] }
  0xa6   :  { %v199_v36 = vmax.f32 %v193_v32, 0.0  ;;  %415 = vmatmul.bf16.vlgmr.msrb.gmra.mxu0 %v243_v33  ;;  %428 = vmatmul.bf16.vlgmr.msrb.gmra.mxu1 %v244_v34 }
  0xa7   :  { %441 = vmatmul.bf16.vlgmr.msrb.gmra.mxu2 %v243_v33  ;;  %454 = vmatmul.bf16.vlgmr.msrb.gmra.mxu3 %v244_v34 }
  0xa8   :  { %v201_v38 = vpack.c.bf16 %v199_v36, %v198_v35 }
  0xaa   :  { %v181_v37 = vpop.f32.mrf.mxu2  ;;  %v500_v40 = vunpack.c.l.b16 %v201_v38  ;;  %v501_v41 = vunpack.c.h.b16 %v201_v38 }
  0xab   :  { %v194_v39 = vpop.f32.mrf.mxu3 }
  0xac   :  { %v502_v42 = vpack.c.b16 %v500_v40, %v500_v40  ;;  %v503_v43 = vpack.c.b16 %v501_v41, %v501_v41 }
  0xb6   :  { %674 = vmatmul.bf16.vlgmr.msra.gmra.mxu0 %v502_v42  ;;  %687 = vmatmul.bf16.vlgmr.msra.gmra.mxu1 %v503_v43 }
  0xb7   :  { %700 = vmatmul.bf16.vlgmr.msra.gmra.mxu2 %v502_v42  ;;  %713 = vmatmul.bf16.vlgmr.msra.gmra.mxu3 %v503_v43 }
 0x123   :  { %v416_v46 = vpop.f32.mrf.mxu0  ;;  %v429_v47 = vpop.f32.mrf.mxu1 }
 0x124   :  { %v417_v48 = vadd.f32 %v416_v46, %v236_v45 }
 0x126   :  { %v430_v49 = vadd.f32 %v429_v47, %v417_v48 }
 0x128   :  { %v718_v54 = vmax.f32 %v430_v49, 0.0 }
 0x12a   :  { %v442_v52 = vpop.f32.mrf.mxu2  ;;  %v455_v53 = vpop.f32.mrf.mxu3  ;;  %v728_v63 = vmul.f32 %v724_v58, %v718_v54 }
 0x12b   :  { %v443_v55 = vadd.f32 %v442_v52, %v237_v50  ;;  %v418_v56 = vpop.f32.mrf.mxu0  ;;  %v431_v57 = vpop.f32.mrf.mxu1 }
 0x12c   :  { %v731_v6 = vsel %vm730_vm1, %v728_v63, 0.0 }
 0x12d   :  { %v456_v59 = vadd.f32 %v455_v53, %v443_v55 }
 0x12f   :  { %v719_v62 = vmax.f32 %v456_v59, 0.0 }
 0x131   :  { %v729_v1 = vmul.f32 %v725_v61, %v719_v62 }
 0x132   :  { %v444_v2 = vpop.f32.mrf.mxu2  ;;  %v457_v3 = vpop.f32.mrf.mxu3 }
 0x133   :  { %v675_v4 = vpop.f32.mrf.mxu0  ;;  %v688_v5 = vpop.f32.mrf.mxu1  ;;  %v732_v7 = vsel %vm730_vm1, %v729_v1, 0.0 }
 0x134   :  { %v676_v8 = vadd.f32 %v675_v4, %v495_v0  ;;  %v733_v9 = vadd.f32 %v732_v7, %v731_v6 }
 0x136   :  { %734 = vadd.xlane.f32.xlu0 %v733_v9  ;;  %v689_v10 = vadd.f32 %v688_v5, %v676_v8 }
 0x138   :  { %v720_v15 = vmax.f32 %v689_v10, 0.0 }
 0x13a   :  { %v701_v13 = vpop.f32.mrf.mxu2  ;;  %v714_v14 = vpop.f32.mrf.mxu3  ;;  %v742_v22 = vmul.f32 %v738_v16, %v720_v15 }
 0x13b   :  { %v702_v17 = vadd.f32 %v701_v13, %v496_v11  ;;  %v677_v18 = vpop.f32.mrf.mxu0  ;;  %v690_v19 = vpop.f32.mrf.mxu1 }
 0x13c   :  { %v744_v27 = vsel %vm730_vm1, %v742_v22, 0.0 }
 0x13d   :  { %v715_v20 = vadd.f32 %v714_v14, %v702_v17 }
 0x13f   :  { %v721_v23 = vmax.f32 %v715_v20, 0.0 }
 0x141   :  { %v743_v24 = vmul.f32 %v739_v21, %v721_v23 }
 0x142   :  { %v703_v25 = vpop.f32.mrf.mxu2  ;;  %v716_v26 = vpop.f32.mrf.mxu3 }
 0x143   :  { %v745_v28 = vsel %vm730_vm1, %v743_v24, 0.0 }
 0x144   :  { %v746_v29 = vadd.f32 %v745_v28, %v744_v27 }
 0x146   :  { %747 = vadd.xlane.f32.xlu0 %v746_v29 }
 0x1a9   :  { %v735_v30 = vpop.xlane.xlu0 %734 }
 0x1b9   :  { %v748_v32 = vpop.xlane.xlu0 %747 }
 0x1ba   :  { %v750_v33 = vsel %vm749_vm2, %v735_v30, %v748_v32 }
 0x1bb   :  { %v755_v34 = vadd.f32 %v1133_v31, %v750_v33 }
 0x1bd   :  { %757 = vst.msk [vmem:[#allocation11] sm:$0x3] %vm756_vm3, %v755_v34 }
 0x1be   :  { %768 = dma.vmem_to_hbm [thread:$0]  %s764_s14, 32, %s766_s17, [#allocation4]  }
 0x1bf   :  { %1284 = dma.done.wait [#allocation4], 32  }
 0x1c0   :  { %1285 = vsyncadd [#allocation4], 4294967264 }
 0x1c1   :  { %773 = vsyncpa [#allocation3], 1 }
 0x1c2   :  { %774 = vsyncpa [#allocation6], 1 }
 0x1c3   :  { %775 = vsyncpa [#allocation9], 1 }
 0x1c4   :  { %776 = vsyncpa [#allocation4], 1 }

</bundles_post_ra>
